<compile_context>
chip_gen: v5e
topology: v5e:2x2
jax: 0.10.0
libtpu: 0.0.40
codegen_flags: <defaults>
</compile_context>

<pallas_src>
import functools

import jax
import jax.numpy as jnp
from jax.experimental import pallas as pl
from jax.experimental.pallas import tpu as pltpu

BN_EPS = 1e-5        # torch.nn.BatchNorm2d default
BN_MOMENTUM = 0.1    # torch.nn.BatchNorm2d default


# ----------------------------- gridded kernels -----------------------------
# Grid is (B, HW_blocks).  x blocks are lane-dense (1, C, TILE); per-channel
# parameters are (F, k) column stacks broadcast along lanes; per-sample
# accumulator outputs are (B, F, 1) with block (1, F, 1) indexed by b only and
# zero-initialized with pl.when on the first HW step.

def _conv_stats_kernel(x_ref, wt_ref, sum_ref, ss_ref, sqm_ref, *, tile):
    """y0 = Wc^T @ x (bias folded out); accumulate per-sample sum(y0), a
    per-tile-mean shifted sum-of-squares and sum(tile * tile_mean^2)."""
    h = pl.program_id(1)

    @pl.when(h == 0)
    def _():
        sum_ref[...] = jnp.zeros_like(sum_ref)
        ss_ref[...] = jnp.zeros_like(ss_ref)
        sqm_ref[...] = jnp.zeros_like(sqm_ref)

    x = x_ref[0].astype(jnp.float32)                                   # (C, T)
    y = jnp.dot(wt_ref[...], x, preferred_element_type=jnp.float32)    # (F, T)
    mt = jnp.mean(y, axis=1, keepdims=True)                            # (F, 1)
    d = y - mt
    sum_ref[...] += jnp.sum(y, axis=1, keepdims=True)[None]
    ss_ref[...] += jnp.sum(d * d, axis=1, keepdims=True)[None]
    sqm_ref[...] += (tile * mt * mt)[None]


def _masked_sums_kernel(x_ref, wt_ref, ps_ref, a_ref, m_ref):
    """z = scale*y0 + shift (BN+bias folded); accumulate the per-sample masked
    sums A = sum(where(z>0, y0, 0)) and M = sum(where(z>0, 1, 0)).  These are
    sufficient for ReLU-pooling (scale*A + shift*M), BN affine grads and the
    BN input-grad reductions (dr hoisted outside the HW sum)."""
    h = pl.program_id(1)

    @pl.when(h == 0)
    def _():
        a_ref[...] = jnp.zeros_like(a_ref)
        m_ref[...] = jnp.zeros_like(m_ref)

    x = x_ref[0].astype(jnp.float32)
    y = jnp.dot(wt_ref[...], x, preferred_element_type=jnp.float32)    # (F, T)
    scale = ps_ref[...][:, 0:1]                                        # (F, 1)
    shift = ps_ref[...][:, 1:2]
    pos = (scale * y + shift) > 0.0
    a_ref[...] += jnp.sum(jnp.where(pos, y, 0.0), axis=1, keepdims=True)[None]
    m_ref[...] += jnp.sum(jnp.where(pos, 1.0, 0.0), axis=1, keepdims=True)[None]


def _fgsm_stats_kernel(x_ref, wt_ref, wc_ref, ps_ref, dr_ref,
                       sum_ref, ss_ref, sqm_ref, *, epsilon, tile):
    """Backward to dx (BN backward folded into scale0 / a / c per-channel
    coefficients), FGSM x_adv = x + eps*sign(dx) (never stored to HBM) and the
    fused 'adv' BN statistics pass on x_adv (shift-compensated sums)."""
    h = pl.program_id(1)

    @pl.when(h == 0)
    def _():
        sum_ref[...] = jnp.zeros_like(sum_ref)
        ss_ref[...] = jnp.zeros_like(ss_ref)
        sqm_ref[...] = jnp.zeros_like(sqm_ref)

    x = x_ref[0].astype(jnp.float32)                                   # (C, T)
    y = jnp.dot(wt_ref[...], x, preferred_element_type=jnp.float32)    # (F, T)
    p = ps_ref[...]
    scale0 = p[:, 0:1]
    shift0 = p[:, 1:2]
    a_co = p[:, 2:3]
    c_co = p[:, 3:4]
    dr = dr_ref[0]                                                     # (F, 1)
    dz = jnp.where(scale0 * y + shift0 > 0.0, dr, 0.0)                 # (F, T)
    dy = dz * scale0 + a_co * y + c_co
    dx = jnp.dot(wc_ref[...], dy, preferred_element_type=jnp.float32)  # (C, T)
    # eps*sign(dx) already lies in [-eps, eps]; the clip in the reference is a no-op.
    xadv = x + epsilon * jnp.sign(dx)

    y1 = jnp.dot(wt_ref[...], xadv, preferred_element_type=jnp.float32)
    mt = jnp.mean(y1, axis=1, keepdims=True)
    d = y1 - mt
    sum_ref[...] += jnp.sum(y1, axis=1, keepdims=True)[None]
    ss_ref[...] += jnp.sum(d * d, axis=1, keepdims=True)[None]
    sqm_ref[...] += (tile * mt * mt)[None]


def _adv_masked_sums_kernel(x_ref, wt_ref, wc_ref, ps_ref, dr_ref,
                            a_ref, m_ref, *, epsilon):
    """Recompute x_adv per tile (no HBM round-trip) and accumulate the 'adv' BN
    masked sums A1 = sum(where(z1>0, y1, 0)), M1 = sum(where(z1>0, 1, 0))."""
    h = pl.program_id(1)

    @pl.when(h == 0)
    def _():
        a_ref[...] = jnp.zeros_like(a_ref)
        m_ref[...] = jnp.zeros_like(m_ref)

    x = x_ref[0].astype(jnp.float32)
    y = jnp.dot(wt_ref[...], x, preferred_element_type=jnp.float32)
    p = ps_ref[...]
    scale0 = p[:, 0:1]
    shift0 = p[:, 1:2]
    a_co = p[:, 2:3]
    c_co = p[:, 3:4]
    scale1 = p[:, 4:5]
    shift1 = p[:, 5:6]
    dr = dr_ref[0]
    dz = jnp.where(scale0 * y + shift0 > 0.0, dr, 0.0)
    dy = dz * scale0 + a_co * y + c_co
    dx = jnp.dot(wc_ref[...], dy, preferred_element_type=jnp.float32)
    xadv = x + epsilon * jnp.sign(dx)

    y1 = jnp.dot(wt_ref[...], xadv, preferred_element_type=jnp.float32)
    pos = (scale1 * y1 + shift1) > 0.0
    a_ref[...] += jnp.sum(jnp.where(pos, y1, 0.0), axis=1, keepdims=True)[None]
    m_ref[...] += jnp.sum(jnp.where(pos, 1.0, 0.0), axis=1, keepdims=True)[None]


# ------------------------------ head kernels -------------------------------
# Tiny [B, F] / [B, K] work; fused so pred / dlogits never round-trip HBM.

def _head1_kernel(pooled_ref, wl_ref, bl_ref, pred_ref, dr_ref, *, inv_hw, inv_b):
    """pred = pooled@Wl + bl; KL(pred.detach(), pred) grad (l1 == l2 simplifies
    to inv_b*(1-p)*(2p-1)); backprop through linear + mean-pool to the
    per-pixel activation gradient dr (already divided by HW)."""
    pooled = pooled_ref[...]
    pred = jnp.dot(pooled, wl_ref[...], preferred_element_type=jnp.float32) + bl_ref[...]
    p = jax.nn.sigmoid(pred)
    dlogits = inv_b * (1.0 - p) * (2.0 * p - 1.0)
    dr = jnp.einsum('bk,fk->bf', dlogits, wl_ref[...],
                    preferred_element_type=jnp.float32) * inv_hw
    pred_ref[...] = pred
    dr_ref[...] = dr


def _head2_kernel(pooled_ref, pred_ref, wl_ref, bl_ref, dr_ref, *, inv_hw, inv_b):
    """pred_adv = pooled_adv@Wl + bl; d/dl1 of KL(pred.detach(), pred_adv,
    reverse=True).mean(); backprop through linear + mean-pool to dr_adv."""
    l1 = jnp.dot(pooled_ref[...], wl_ref[...],
                 preferred_element_type=jnp.float32) + bl_ref[...]
    l2 = pred_ref[...]
    p1 = jax.nn.sigmoid(l1)
    logp1 = jax.nn.log_sigmoid(l1)      # numerically safe (no log(sigmoid) underflow)
    logp2 = jax.nn.log_sigmoid(l2)
    dlogits = inv_b * (2.0 * p1 * (1.0 - p1) * (logp1 - logp2)
                       + (1.0 - p1) * (2.0 * p1 - 1.0))
    dr_ref[...] = jnp.einsum('bk,fk->bf', dlogits, wl_ref[...],
                             preferred_element_type=jnp.float32) * inv_hw


def _head_eval_kernel(pooled_ref, wl_ref, bl_ref, out_ref):
    out_ref[...] = jnp.dot(pooled_ref[...], wl_ref[...],
                           preferred_element_type=jnp.float32) + bl_ref[...]


# ------------------------------ JAX wrapper -------------------------------

def _pick_tile(hw, f, c):
    """Largest multiple-of-128 lane tile that divides HW, capped so the ~12
    live (F,TILE)/(C,TILE) f32 temporaries of the FGSM kernel stay within a
    few MiB of VMEM (fits v5e/v6e and v7x's 64 MiB per-core budget)."""
    if hw % 128 != 0:
        return hw                                   # single full-width block
    budget = 6 * 1024 * 1024
    cap = budget // (12 * 4 * max(f + c, 1))
    cap = max(128, min(2048, (cap // 128) * 128))
    t = min(cap, hw)
    while t >= 128:
        if hw % t == 0:
            return t
        t -= 128
    return hw


def _x_block_spec(c, tile, hb):
    """Lane-dense x block; 3-deep buffering when the HW grid is long enough."""
    idx = lambda b, h: (b, 0, h)
    if hb >= 3:
        try:
            return pl.BlockSpec((1, c, tile), idx, pipeline_mode=pl.Buffered(3))
        except TypeError:                           # older jax without pipeline_mode
            pass
    return pl.BlockSpec((1, c, tile), idx)


def init_params(key, C, F, K):
    """Deterministic synthetic backbone parameters (conv1x1 -> BN -> linear)."""
    k1, k2, k3, k4 = jax.random.split(key, 4)
    return dict(
        Wc=jax.random.normal(k1, (C, F), jnp.float32) * 0.3,   # 1x1 conv weight
        bc=jax.random.normal(k2, (1, F), jnp.float32) * 0.1,   # conv bias
        gamma=jnp.ones((1, F), jnp.float32),                   # BN weight
        beta=jnp.zeros((1, F), jnp.float32),                   # BN bias
        Wl=jax.random.normal(k3, (F, K), jnp.float32) * 0.3,   # linear weight
        bl=jax.random.normal(k4, (1, K), jnp.float32) * 0.1,   # linear bias
        rmean=jnp.zeros((1, F), jnp.float32),                  # BN running mean
        rvar=jnp.ones((1, F), jnp.float32),                    # BN running var
    )


def tipi_forward(x_nchw, params, lr_per_sample=0.00025 / 64, epsilon=2.0 / 255.0):
    B, C, H, W = x_nchw.shape
    HW = H * W
    N = B * HW
    # Lane-dense layout (HW on the 128-lane axis) and bf16 HBM streaming.
    x = x_nchw.reshape(B, C, HW).astype(jnp.bfloat16)

    Wc, bc = params['Wc'], params['bc']
    gamma, beta = params['gamma'], params['beta']
    Wl, bl = params['Wl'], params['bl']
    rmean, rvar = params['rmean'], params['rvar']
    F = Wc.shape[1]
    K = Wl.shape[1]

    Wt = Wc.T.astype(jnp.float32)                    # (F, C): y0 = Wt @ x_tile
    Wc_f = Wc.astype(jnp.float32)                    # (C, F): dx = Wc @ dy
    col = lambda v: v.reshape(F, 1).astype(jnp.float32)
    row = lambda v: v.reshape(1, F)
    bc_c, gamma_c, beta_c = col(bc), col(gamma), col(beta)

    TILE = _pick_tile(HW, F, C)
    HB = HW // TILE
    grid = (B, HB)
    inv_hw = 1.0 / HW
    inv_b = 1.0 / B

    x_spec = _x_block_spec(C, TILE, HB)
    wt_spec = pl.BlockSpec((F, C), lambda b, h: (0, 0))
    wc_spec = pl.BlockSpec((C, F), lambda b, h: (0, 0))
    par_spec = lambda k: pl.BlockSpec((F, k), lambda b, h: (0, 0))
    samp_spec = pl.BlockSpec((1, F, 1), lambda b, h: (b, 0, 0))
    samp = jax.ShapeDtypeStruct((B, F, 1), jnp.float32)

    # Batch axis megacore-parallel (2x on v7x dual-TC, no-op on v5e/v6e); HW is
    # the accumulation axis.  TODO(synk): if B == 1 on v7x, split HW across the
    # two cores via two partial accumulators instead.
    cparams = pltpu.CompilerParams(
        dimension_semantics=("parallel", "arbitrary"),
        vmem_limit_bytes=32 * 1024 * 1024)

    conv_stats = pl.pallas_call(
        functools.partial(_conv_stats_kernel, tile=float(TILE)), grid=grid,
        in_specs=[x_spec, wt_spec],
        out_specs=(samp_spec,) * 3, out_shape=(samp,) * 3,
        compiler_params=cparams)

    masked_sums = pl.pallas_call(
        _masked_sums_kernel, grid=grid,
        in_specs=[x_spec, wt_spec, par_spec(2)],
        out_specs=(samp_spec, samp_spec), out_shape=(samp, samp),
        compiler_params=cparams)

    fgsm_stats = pl.pallas_call(
        functools.partial(_fgsm_stats_kernel, epsilon=float(epsilon),
                          tile=float(TILE)), grid=grid,
        in_specs=[x_spec, wt_spec, wc_spec, par_spec(4), samp_spec],
        out_specs=(samp_spec,) * 3, out_shape=(samp,) * 3,
        compiler_params=cparams)

    adv_masked_sums = pl.pallas_call(
        functools.partial(_adv_masked_sums_kernel, epsilon=float(epsilon)),
        grid=grid,
        in_specs=[x_spec, wt_spec, wc_spec, par_spec(6), samp_spec],
        out_specs=(samp_spec, samp_spec), out_shape=(samp, samp),
        compiler_params=cparams)

    vm = pl.BlockSpec(memory_space=pltpu.MemorySpace.VMEM)
    head1 = pl.pallas_call(
        functools.partial(_head1_kernel, inv_hw=inv_hw, inv_b=inv_b),
        out_shape=(jax.ShapeDtypeStruct((B, K), jnp.float32),
                   jax.ShapeDtypeStruct((B, F), jnp.float32)),
        in_specs=[vm] * 3, out_specs=(vm, vm))
    head2 = pl.pallas_call(
        functools.partial(_head2_kernel, inv_hw=inv_hw, inv_b=inv_b),
        out_shape=jax.ShapeDtypeStruct((B, F), jnp.float32),
        in_specs=[vm] * 4, out_specs=vm)
    head_eval = pl.pallas_call(
        _head_eval_kernel,
        out_shape=jax.ShapeDtypeStruct((B, K), jnp.float32),
        in_specs=[vm] * 3, out_specs=vm)

    # ---- 1) 'main' BN batch statistics (shift-compensated single pass) ------
    sum0, ss0, sqm0 = conv_stats(x, Wt)                      # stats of y0 = x@Wc
    tot0 = jnp.sum(sum0, axis=0)                             # (F, 1)
    mean0_raw = tot0 / N
    var0 = jnp.maximum(
        (jnp.sum(ss0, axis=0) + jnp.sum(sqm0, axis=0)
         - N * mean0_raw * mean0_raw) / N, 0.0)
    invstd0 = jax.lax.rsqrt(var0 + BN_EPS)
    scale0 = gamma_c * invstd0                               # (F, 1)
    shift0 = beta_c - mean0_raw * scale0                     # z = scale0*y0 + shift0

    # running-stat update of the 'main' BN (momentum 0.1, unbiased var)
    unbiased0 = var0 * (N / max(N - 1.0, 1.0))
    rmean_new = (1.0 - BN_MOMENTUM) * rmean + BN_MOMENTUM * row(mean0_raw + bc_c)
    rvar_new = (1.0 - BN_MOMENTUM) * rvar + BN_MOMENTUM * row(unbiased0)

    # ---- 1b) main train forward: ReLU-pooling via masked sums ---------------
    ps0 = jnp.concatenate([scale0, shift0], axis=1)          # (F, 2)
    msum0, mcnt0 = masked_sums(x, Wt, ps0)
    msum0, mcnt0 = msum0[:, :, 0], mcnt0[:, :, 0]            # (B, F)
    pooled0 = (msum0 * row(scale0) + mcnt0 * row(shift0)) * inv_hw

    # ---- 2) head: logits, KL grad at l1 == l2, backward to per-pixel dr0 ----
    pred, dr0 = head1(pooled0, Wl, bl)

    # ---- 3a) BN input-gradient reductions (dr hoisted out of the HW sums) ---
    g_r, m0_r, i0_r = row(gamma_c), row(mean0_raw), row(invstd0)
    s1 = g_r * jnp.sum(dr0 * (msum0 - m0_r * mcnt0), axis=0, keepdims=True)  # sum(dyhat*ym)
    s2 = g_r * jnp.sum(dr0 * mcnt0, axis=0, keepdims=True)                    # sum(dyhat)
    s3 = row(tot0) - N * m0_r                                                 # sum(ym) (~0)
    dvar = s1 * (-0.5) * i0_r * i0_r * i0_r
    dmean = -i0_r * s2 + dvar * (-2.0 / N) * s3
    a_co = 2.0 * dvar / N                       # dy = dz*scale0 + a*y0 + c
    c_co = dmean / N - a_co * m0_r

    # ---- 3b) FGSM + fused 'adv' BN statistics on x_adv (never stored) -------
    dr0_col = dr0[:, :, None]                                # (B, F, 1)
    ps1 = jnp.concatenate(
        [scale0, shift0, a_co.reshape(F, 1), c_co.reshape(F, 1)], axis=1)
    sum1, ss1, sqm1 = fgsm_stats(x, Wt, Wc_f, ps1, dr0_col)
    mean1_raw = jnp.sum(sum1, axis=0) / N
    var1 = jnp.maximum(
        (jnp.sum(ss1, axis=0) + jnp.sum(sqm1, axis=0)
         - N * mean1_raw * mean1_raw) / N, 0.0)
    invstd1 = jax.lax.rsqrt(var1 + BN_EPS)
    scale1 = gamma_c * invstd1
    shift1 = beta_c - mean1_raw * scale1

    # ---- 4) adv train forward (x_adv recomputed per tile) -------------------
    ps2 = jnp.concatenate([ps1, scale1, shift1], axis=1)     # (F, 6)
    msum1, mcnt1 = adv_masked_sums(x, Wt, Wc_f, ps2, dr0_col)
    msum1, mcnt1 = msum1[:, :, 0], mcnt1[:, :, 0]
    pooled1 = (msum1 * row(scale1) + mcnt1 * row(shift1)) * inv_hw

    # ---- 5) adv head: reverse-KL grad -> dr1; BN affine grads from A1/M1 ----
    dr1 = head2(pooled1, pred, Wl, bl)
    m1_r, i1_r = row(mean1_raw), row(invstd1)
    dgamma = i1_r * jnp.sum(dr1 * (msum1 - m1_r * mcnt1), axis=0, keepdims=True)
    dbeta = jnp.sum(dr1 * mcnt1, axis=0, keepdims=True)

    # ---- 6) SGD step (lr = lr_per_sample*B; first momentum step == grad step)
    lr = lr_per_sample * B
    gamma_new = gamma - lr * dgamma
    beta_new = beta - lr * dbeta
    # TODO(synk): PyTorch mutates model/optimizer state in place; this functional
    # wrapper computes the adapted state but, like the torch forward, returns
    # only the prediction.

    # ---- 7) eval forward: BN(running stats, new affine) folded to scale/shift
    scale_e = gamma_new * jax.lax.rsqrt(rvar_new + BN_EPS)   # (1, F)
    shift_e = (bc - rmean_new) * scale_e + beta_new
    ps_e = jnp.concatenate([scale_e.reshape(F, 1), shift_e.reshape(F, 1)], axis=1)
    msum_e, mcnt_e = masked_sums(x, Wt, ps_e)
    pooled_e = (msum_e[:, :, 0] * scale_e + mcnt_e[:, :, 0] * shift_e) * inv_hw
    return head_eval(pooled_e, Wl, bl)


if __name__ == "__main__":
    key = jax.random.PRNGKey(0)
    kx, kp = jax.random.split(key)
    B, C, H, W = 2, 4, 16, 16
    F, K = 8, 8
    x = jax.random.normal(kx, (B, C, H, W), jnp.float32)
    params = init_params(kp, C, F, K)

    pred = tipi_forward(x, params)
    jax.block_until_ready(pred)
    assert pred.shape == (B, K)
    assert bool(jnp.all(jnp.isfinite(pred)))
    print("KERNEL_OK")
</pallas_src>

<mosaic_0001>
module attributes {stable_mosaic.version = 11 : i64} {
  func.func @_conv_stats_kernel(%arg0: i32, %arg1: i32, %arg2: memref<1x4x256xbf16, #tpu.memory_space<vmem>>, %arg3: memref<8x4xf32, #tpu.memory_space<vmem>>, %arg4: memref<1x8x1xf32, #tpu.memory_space<vmem>>, %arg5: memref<1x8x1xf32, #tpu.memory_space<vmem>>, %arg6: memref<1x8x1xf32, #tpu.memory_space<vmem>>) attributes {dimension_semantics = [#tpu.dimension_semantics<parallel>, #tpu.dimension_semantics<arbitrary>], iteration_bounds = array<i64: 2, 1>, scalar_prefetch = 0 : i64, scratch_operands = 0 : i64, tpu.core_type = #tpu.core_type<tc>, window_params = [{transform_indices = @transform_0, window_bounds = array<i64: 1, 4, 256>}, {pipeline_mode = #tpu.pipeline_mode<synchronous>, transform_indices = @transform_1, window_bounds = array<i64: 8, 4>}, {transform_indices = @transform_2, window_bounds = array<i64: 1, 8, 1>}, {transform_indices = @transform_3, window_bounds = array<i64: 1, 8, 1>}, {transform_indices = @transform_4, window_bounds = array<i64: 1, 8, 1>}]} {
    %c0_i32 = arith.constant 0 : i32
    %0 = arith.cmpi eq, %arg1, %c0_i32 : i32
    %1 = arith.extui %0 : i1 to i32
    %c0_i32_0 = arith.constant 0 : i32
    %2 = arith.cmpi ne, %1, %c0_i32_0 : i32
    scf.if %2 {
      %cst_28 = arith.constant 0.000000e+00 : f32
      %34 = vector.broadcast %cst_28 : f32 to vector<1x8x1xf32>
      %c0_29 = arith.constant 0 : index
      %c0_30 = arith.constant 0 : index
      %c0_31 = arith.constant 0 : index
      %35 = vector.load %arg4[%c0_29, %c0_30, %c0_31] : memref<1x8x1xf32, #tpu.memory_space<vmem>>, vector<1x8x1xf32>
      tpu.vector_store %arg4[%c0_29, %c0_30, %c0_31], %34 {strides = array<i32>} : memref<1x8x1xf32, #tpu.memory_space<vmem>>, vector<1x8x1xf32>,
      %cst_32 = arith.constant 0.000000e+00 : f32
      %36 = vector.broadcast %cst_32 : f32 to vector<1x8x1xf32>
      %c0_33 = arith.constant 0 : index
      %c0_34 = arith.constant 0 : index
      %c0_35 = arith.constant 0 : index
      %37 = vector.load %arg5[%c0_33, %c0_34, %c0_35] : memref<1x8x1xf32, #tpu.memory_space<vmem>>, vector<1x8x1xf32>
      tpu.vector_store %arg5[%c0_33, %c0_34, %c0_35], %36 {strides = array<i32>} : memref<1x8x1xf32, #tpu.memory_space<vmem>>, vector<1x8x1xf32>,
      %cst_36 = arith.constant 0.000000e+00 : f32
      %38 = vector.broadcast %cst_36 : f32 to vector<1x8x1xf32>
      %c0_37 = arith.constant 0 : index
      %c0_38 = arith.constant 0 : index
      %c0_39 = arith.constant 0 : index
      %39 = vector.load %arg6[%c0_37, %c0_38, %c0_39] : memref<1x8x1xf32, #tpu.memory_space<vmem>>, vector<1x8x1xf32>
      tpu.vector_store %arg6[%c0_37, %c0_38, %c0_39], %38 {strides = array<i32>} : memref<1x8x1xf32, #tpu.memory_space<vmem>>, vector<1x8x1xf32>,
    } else {
    }
    %c0 = arith.constant 0 : index
    %c0_1 = arith.constant 0 : index
    %c0_2 = arith.constant 0 : index
    %3 = vector.load %arg2[%c0, %c0_1, %c0_2] : memref<1x4x256xbf16, #tpu.memory_space<vmem>>, vector<1x4x256xbf16>
    %4 = vector.shape_cast %3 : vector<1x4x256xbf16> to vector<4x256xbf16>
    %5 = arith.extf %4 : vector<4x256xbf16> to vector<4x256xf32>
    %c0_3 = arith.constant 0 : index
    %c0_4 = arith.constant 0 : index
    %6 = vector.load %arg3[%c0_3, %c0_4] : memref<8x4xf32, #tpu.memory_space<vmem>>, vector<8x4xf32>
    %cst = arith.constant dense<0.000000e+00> : vector<8x256xf32>
    %7 = tpu.matmul %6, %5, %cst {dimension_numbers = #tpu.dot_dimension_numbers<[1], [0], [0], [1], [0, 0, 1, 1], [], []>} : vector<8x4xf32>, vector<4x256xf32>, vector<8x256xf32> -> vector<8x256xf32>
    %cst_5 = arith.constant dense<0.000000e+00> : vector<8xf32>
    %8 = vector.multi_reduction <add>, %7, %cst_5 [1] : vector<8x256xf32> to vector<8xf32>
    %9 = vector.shape_cast %8 : vector<8xf32> to vector<8x1xf32>
    %cst_6 = arith.constant 2.560000e+02 : f32
    %10 = vector.broadcast %cst_6 : f32 to vector<8x1xf32>
    %11 = arith.divf %9, %10 : vector<8x1xf32>
    %12 = vector.broadcast %11 : vector<8x1xf32> to vector<8x256xf32>
    %13 = arith.subf %7, %12 : vector<8x256xf32>
    %c0_7 = arith.constant 0 : index
    %c0_8 = arith.constant 0 : index
    %c0_9 = arith.constant 0 : index
    %14 = vector.load %arg4[%c0_7, %c0_8, %c0_9] : memref<1x8x1xf32, #tpu.memory_space<vmem>>, vector<1x8x1xf32>
    %cst_10 = arith.constant dense<0.000000e+00> : vector<8xf32>
    %15 = vector.multi_reduction <add>, %7, %cst_10 [1] : vector<8x256xf32> to vector<8xf32>
    %16 = vector.shape_cast %15 : vector<8xf32> to vector<8x1xf32>
    %17 = vector.shape_cast %16 : vector<8x1xf32> to vector<1x8x1xf32>
    %18 = arith.addf %14, %17 : vector<1x8x1xf32>
    %c0_11 = arith.constant 0 : index
    %c0_12 = arith.constant 0 : index
    %c0_13 = arith.constant 0 : index
    %19 = vector.load %arg4[%c0_11, %c0_12, %c0_13] : memref<1x8x1xf32, #tpu.memory_space<vmem>>, vector<1x8x1xf32>
    tpu.vector_store %arg4[%c0_11, %c0_12, %c0_13], %18 {strides = array<i32>} : memref<1x8x1xf32, #tpu.memory_space<vmem>>, vector<1x8x1xf32>,
    %c0_14 = arith.constant 0 : index
    %c0_15 = arith.constant 0 : index
    %c0_16 = arith.constant 0 : index
    %20 = vector.load %arg5[%c0_14, %c0_15, %c0_16] : memref<1x8x1xf32, #tpu.memory_space<vmem>>, vector<1x8x1xf32>
    %21 = arith.mulf %13, %13 : vector<8x256xf32>
    %cst_17 = arith.constant dense<0.000000e+00> : vector<8xf32>
    %22 = vector.multi_reduction <add>, %21, %cst_17 [1] : vector<8x256xf32> to vector<8xf32>
    %23 = vector.shape_cast %22 : vector<8xf32> to vector<8x1xf32>
    %24 = vector.shape_cast %23 : vector<8x1xf32> to vector<1x8x1xf32>
    %25 = arith.addf %20, %24 : vector<1x8x1xf32>
    %c0_18 = arith.constant 0 : index
    %c0_19 = arith.constant 0 : index
    %c0_20 = arith.constant 0 : index
    %26 = vector.load %arg5[%c0_18, %c0_19, %c0_20] : memref<1x8x1xf32, #tpu.memory_space<vmem>>, vector<1x8x1xf32>
    tpu.vector_store %arg5[%c0_18, %c0_19, %c0_20], %25 {strides = array<i32>} : memref<1x8x1xf32, #tpu.memory_space<vmem>>, vector<1x8x1xf32>,
    %c0_21 = arith.constant 0 : index
    %c0_22 = arith.constant 0 : index
    %c0_23 = arith.constant 0 : index
    %27 = vector.load %arg6[%c0_21, %c0_22, %c0_23] : memref<1x8x1xf32, #tpu.memory_space<vmem>>, vector<1x8x1xf32>
    %cst_24 = arith.constant 2.560000e+02 : f32
    %28 = vector.broadcast %cst_24 : f32 to vector<8x1xf32>
    %29 = arith.mulf %28, %11 : vector<8x1xf32>
    %30 = arith.mulf %29, %11 : vector<8x1xf32>
    %31 = vector.shape_cast %30 : vector<8x1xf32> to vector<1x8x1xf32>
    %32 = arith.addf %27, %31 : vector<1x8x1xf32>
    %c0_25 = arith.constant 0 : index
    %c0_26 = arith.constant 0 : index
    %c0_27 = arith.constant 0 : index
    %33 = vector.load %arg6[%c0_25, %c0_26, %c0_27] : memref<1x8x1xf32, #tpu.memory_space<vmem>>, vector<1x8x1xf32>
    tpu.vector_store %arg6[%c0_25, %c0_26, %c0_27], %32 {strides = array<i32>} : memref<1x8x1xf32, #tpu.memory_space<vmem>>, vector<1x8x1xf32>,
    return
  }
  func.func @transform_0(%arg0: i32, %arg1: i32) -> (i32, i32, i32) {
    %c0_i32 = arith.constant 0 : i32
    %c0_i32_0 = arith.constant 0 : i32
    return %arg0, %c0_i32, %arg1 : i32, i32, i32
  }
  func.func @transform_1(%arg0: i32, %arg1: i32) -> (i32, i32) {
    %c0_i32 = arith.constant 0 : i32
    %c0_i32_0 = arith.constant 0 : i32
    %c0_i32_1 = arith.constant 0 : i32
    return %c0_i32, %c0_i32_0 : i32, i32
  }
  func.func @transform_2(%arg0: i32, %arg1: i32) -> (i32, i32, i32) {
    %c0_i32 = arith.constant 0 : i32
    %c0_i32_0 = arith.constant 0 : i32
    %c0_i32_1 = arith.constant 0 : i32
    return %arg0, %c0_i32, %c0_i32_0 : i32, i32, i32
  }
  func.func @transform_3(%arg0: i32, %arg1: i32) -> (i32, i32, i32) {
    %c0_i32 = arith.constant 0 : i32
    %c0_i32_0 = arith.constant 0 : i32
    %c0_i32_1 = arith.constant 0 : i32
    return %arg0, %c0_i32, %c0_i32_0 : i32, i32, i32
  }
  func.func @transform_4(%arg0: i32, %arg1: i32) -> (i32, i32, i32) {
    %c0_i32 = arith.constant 0 : i32
    %c0_i32_0 = arith.constant 0 : i32
    %c0_i32_1 = arith.constant 0 : i32
    return %arg0, %c0_i32, %c0_i32_0 : i32, i32, i32
  }
}

</mosaic_0001>

<bundles_post_ra>
// kernel: tpu_custom_call.1
= control target key start
LH: loop header
LB: loop body
LE: loop exit
PB: predicated region body
PF: predicated region fallthrough
CT: control target
= control target key end

     0   :  { %s564_s15 = smov 0   ;;  %s566_s16 = smov 0   ;;  %s622_s0 = inlined_call_operand.vmem [shape: bf16[2,4,256], index: 0, kind: input, shape index: {}]   ;;  %s623_s1 = inlined_call_operand.vmem [shape: f32[8,4], index: 1, kind: input, shape index: {}]   ;;  %s624_s2 = inlined_call_operand.vmem [shape: f32[2,8,1], index: 2, kind: output, shape index: {0}]   ;;  %s625_s3 = inlined_call_operand.vmem [shape: f32[2,8,1], index: 3, kind: output, shape index: {1}]   ;;  %s626_s4 = inlined_call_operand.vmem [shape: f32[2,8,1], index: 4, kind: output, shape index: {2}]  }
   0x1   :  { %s568_s17 = smov 0  }
   0x2 LB: > { %s27_s18 = sadd.s32 1, %s531_s16  ;;  %p472_p0 = scmp.ge.s32.totalorder %s535_s17, 1  ;;  %s535_s17 = sphi %s568_s17, %s15_s17   ;;  %s531_s16 = sphi %s566_s16, %s628_s16   ;;  %s527_s15 = sphi %s564_s15, %s627_s15  }
   0x3   : > { %p29_p1 = scmp.ge.s32.totalorder %s27_s18, 2  ;;  %p186_p2 = scmp.lt.s32.totalorder %s535_s17, 3 }
   0x5   : > { %s630_s18 = smov (%p29_p1, %s27_s18), 0  ;;  %p187_p3 = pnand %p472_p0, %p186_p2 }
   0x6   : > { %p224_p4 = scmp.lt.s32.totalorder (!%p187_p3), %s527_s15, 1 }
   0x7   : > { %190 = sbr.rel (%p187_p3) target bundleno = 398 (0x18e), region = 28 }
   0xc   : > { %s632_s15 = smov (!%p224_p4, %s527_s15), 1  ;;  %vm264_vm0 = vcmask 1043456   ;;  %v255_v2 = vld [vmem:[%s623_s1] sm:$0xff]  ;;  %vm260_vm1 = vcmask 31744   ;;  %vm249_vm2 = vcmask 7168   ;;  %v537_v5 = vmov 0.0  }
   0xd   : > { %s484_s19 = sshll.u32 %s632_s15, 2  ;;  %s475_s25 = sshll.u32 %s632_s15, 3  ;;  %v538_v9 = vmov 256.0  }
   0xe   : > { %s231_s22 = scalar_lea.vmem %s622_s0, %s484_s19  ;;  %s236_s28 = scalar_lea.vmem %s624_s2, %s475_s25  ;;  %511 = vrcp.f32 %v538_v9 }
   0xf   : > { %v253_v0 = vld [vmem:[%s231_s22] sm:$0xf]  ;;  %s594_s5 = scalar_lea.vmem %s626_s4, %s475_s25  ;;  %250 = vst.msk [vmem:[%s236_s28] sm:$0xff] %vm249_vm2, %v537_v5  ;;  %s602_s8 = scalar_lea.vmem %s625_s3, %s475_s25 }
  0x10   : > { %v254_v1 = vunpack.c.l.bf16 %v253_v0  ;;  %252 = vst.msk [vmem:[%s594_s5] sm:$0xff] %vm249_vm2, %v537_v5 }
  0x11   : > { %251 = vst.msk [vmem:[%s602_s8] sm:$0xff] %vm249_vm2, %v537_v5 }
  0x12   : > { %257 = vst [vmem:[#allocation1] ss:$2 sm:$0xff] %v254_v1 }
  0x14   : > { %v512_v10 = vpop.eup %511 }
  0x15   : > { %v313_v11 = vmul.f32 256.0, %v512_v10  ;;  %vm317_vm3 = vweird.f32 %v512_v10 }
  0x16   : > { %v322_v16 = vld [vmem:[%s236_s28] sm:$0xff] }
  0x17   : > { %v314_v12 = vsub.f32 1.0, %v313_v11  ;;  %v334_v23 = vld [vmem:[%s594_s5] sm:$0xff] }
  0x18   : > { %v326_v29 = vld [vmem:[%s602_s8] sm:$0xff] }
  0x19   : > { %v258_v3 = vld.sshfl [vmem:[#allocation1] sm:$0xff pattern:$0x75316420]  ;;  %v259_v4 = vld.sshfl [vmem:[#allocation1 + $0x8] sm:$0xff pattern:$0x75316420]  ;;  %v315_v13 = vmul.f32 %v512_v10, %v314_v12 }
  0x1a   : > { %478 = vmatpush.msk.msra.mxu0 %vm264_vm0, %v258_v3  ;;  %480 = vmatpush.msk.msra.mxu1 %vm264_vm0, %v259_v4 }
  0x1b   : > { %479 = vmatmul.msk.f32.vlgmr.msra.gmra.mxu0 %vm260_vm1, %v255_v2  ;;  %481 = vmatmul.msk.f32.vlgmr.msra.gmra.mxu1 %vm260_vm1, %v255_v2  ;;  %v316_v14 = vadd.f32 %v512_v10, %v315_v13 }
  0x1d   : > { %v318_v15 = vsel %vm317_vm3, %v512_v10, %v316_v14 }
  0x98   : > { %v286_v6 = vpop.f32.mrf.mxu0  ;;  %v306_v7 = vpop.f32.mrf.mxu1 }
  0x99   : > { %v309_v8 = vadd.f32 %v306_v7, %v286_v6 }
  0x9b   : > { %310 = vadd.xlane.f32.xlu0 %v309_v8 }
 0x10e   : > { %v311_v17 = vpop.xlane.xlu0 %310 }
 0x10f   : > { %v319_v18 = vmul.f32 %v318_v15, %v311_v17  ;;  %v323_v19 = vadd.f32 %v322_v16, %v311_v17 }
 0x111   : > { %325 = vst.msk [vmem:[%s236_s28] sm:$0xff] %vm249_vm2, %v323_v19  ;;  %v335_v20 = vmul.f32 256.0, %v319_v18  ;;  %v320_v21 = vsub.f32 %v286_v6, %v319_v18  ;;  %v321_v22 = vsub.f32 %v306_v7, %v319_v18 }
 0x113   : > { %v336_v24 = vmul.f32 %v335_v20, %v319_v18  ;;  %v327_v25 = vmul.f32 %v320_v21, %v320_v21  ;;  %v328_v26 = vmul.f32 %v321_v22, %v321_v22 }
 0x115   : > { %v337_v27 = vadd.f32 %v336_v24, %v334_v23  ;;  %v329_v28 = vadd.f32 %v328_v26, %v327_v25 }
 0x117   : > { %338 = vst.msk [vmem:[%s594_s5] sm:$0xff] %vm249_vm2, %v337_v27  ;;  %330 = vadd.xlane.f32.xlu0 %v329_v28 }
 0x18a   : > { %v331_v30 = vpop.xlane.xlu0 %330 }
 0x18b   : > { %v332_v31 = vadd.f32 %v331_v30, %v326_v29 }
 0x18d   : > { %333 = vst.msk [vmem:[%s602_s8] sm:$0xff] %vm249_vm2, %v332_v31 }
 0x18e PF: > { %s15_s17 = sadd.s32 1, %s535_s17   ;;  %s627_s15 = smov %s531_s16 }
 0x18f   : > { %p12_p5 = scmp.ge.s32.totalorder %s15_s17, 4   ;;  %s628_s16 = smov %s630_s18 }
 0x191   :  { %14 = sbr.rel (!%p12_p5) target bundleno = 2 (0x2), region = 86 }

</bundles_post_ra>
